<compile_context>
chip_gen: v7x
topology: tpu7x:2x2x1
jax: 0.10.0
libtpu: 0.0.40
codegen_flags: <defaults>
</compile_context>

<pallas_src>
import jax
import jax.numpy as jnp
from jax.experimental import pallas as pl
from jax.experimental.pallas import tpu as pltpu


_DEFAULT_SCOPED_VMEM = 32 * 1024 * 1024    # compiler default scoped limit
_VMEM_BUDGET_BYTES = 48 * 1024 * 1024      # conservative: v7x has 64 MiB / TC
_VMEM_HARD_CAP = 64 * 1024 * 1024


def _round_up(x, m):
    return ((x + m - 1) // m) * m


def _vmem_estimate(block, v, d, table_bytes):
    """Rough per-TensorCore VMEM footprint of the one-hot path."""
    table = 2 * v * d * table_bytes        # resident table (2 buffers, conservative)
    out = 2 * block * d * 4                # double-buffered output tile
    tok = 2 * block * 4                    # double-buffered token ids
    val = 2 * block * 4                    # double-buffered values
    onehot = block * v * table_bytes       # (block, V) one-hot intermediate
    acc = block * d * 4                    # f32 matmul result
    return table + out + tok + val + onehot + acc


# ---------------------------------------------------------------------------
# Kernels
# ---------------------------------------------------------------------------
def _fused_gather_kernel(tok_ref, table_ref, out_ref):
    """out = table[tokens]   (gather via one-hot x resident-table MXU matmul)

    tok_ref  : (TN, 1) int32
    table_ref: (V, D)  f32/bf16   (grid-invariant)
    out_ref  : (TN, D) float32
    """
    tn = tok_ref.shape[0]
    v = table_ref.shape[0]
    col = jax.lax.broadcasted_iota(jnp.int32, (tn, v), 1)
    onehot = (tok_ref[...] == col).astype(table_ref.dtype)            # (TN, V)
    out_ref[...] = jnp.dot(
        onehot, table_ref[...], preferred_element_type=jnp.float32
    ).astype(out_ref.dtype)


def _discrete_plus_values_kernel(tok_ref, val_ref, table_ref, vw_ref, out_ref):
    """out = index_weight[tokens] + values[:, None] * value_weight_row

    tok_ref  : (TN, 1) int32
    val_ref  : (TN, 1) float32
    table_ref: (V, D)  f32/bf16   (grid-invariant)
    vw_ref   : (1, D)  float32    (== value_layer.weight.T)
    out_ref  : (TN, D) float32
    """
    tn = tok_ref.shape[0]
    v = table_ref.shape[0]
    col = jax.lax.broadcasted_iota(jnp.int32, (tn, v), 1)
    onehot = (tok_ref[...] == col).astype(table_ref.dtype)            # (TN, V)
    tok_emb = jnp.dot(onehot, table_ref[...], preferred_element_type=jnp.float32)
    val_emb = val_ref[...].astype(jnp.float32) * vw_ref[...].astype(jnp.float32)
    out_ref[...] = (tok_emb + val_emb).astype(out_ref.dtype)


# ---------------------------------------------------------------------------
# Wrapper
# ---------------------------------------------------------------------------
def discrete_continuous_embedding(
    tokens,
    index_weight,
    token_values,
    value_weight_row,
    values=None,
    *,
    block_n=1024,
    use_bf16_mxu=False,
):
    """Pallas forward of DiscreteContinuousEmbedding.

    tokens:            (...,) int32
    index_weight:      (V, D) float32
    token_values:      (V, 1) float32
    value_weight_row:  (1, D) float32  (== value_layer.weight.T)
    values (optional): same shape as tokens, float32
    returns:           tokens.shape + (D,) float32
    """
    v, d = index_weight.shape
    out_struct_shape = tokens.shape + (d,)

    tok_flat = tokens.reshape(-1, 1).astype(jnp.int32)
    n = tok_flat.shape[0]
    n_rounded = _round_up(max(n, 1), 8)

    # --- row-block size ----------------------------------------------------
    block = _round_up(min(block_n, n_rounded), 8)
    # v7x megacore: keep >= 2 grid steps (one per TensorCore) when there's
    # enough work to split.
    if n_rounded >= 1024 and pl.cdiv(n_rounded, block) < 2:
        block = _round_up(pl.cdiv(n_rounded, 2), 8)

    # --- VMEM gating (re-derived for v7x's 64 MiB / TensorCore) -------------
    table_bytes = 2 if use_bf16_mxu else 4
    est = _vmem_estimate(block, v, d, table_bytes)
    while est > _VMEM_BUDGET_BYTES and block > 256:
        block = max(256, _round_up(block // 2, 8))
        est = _vmem_estimate(block, v, d, table_bytes)
    if est > _VMEM_BUDGET_BYTES and not use_bf16_mxu:
        use_bf16_mxu = True                 # halve the resident-table footprint
        table_bytes = 2
        est = _vmem_estimate(block, v, d, table_bytes)
    if est > _VMEM_BUDGET_BYTES:
        # TODO(synk): large-vocab DMA row-gather path (scalar-prefetched ids).
        raise NotImplementedError(
            "vocab/embedding too large for the resident-table one-hot path; "
            "the DMA row-gather path is not implemented")

    mxu_dtype = jnp.bfloat16 if use_bf16_mxu else jnp.float32

    # --- pad rows to a block multiple (pad id 0 == padding_idx) -------------
    n_pad = _round_up(n, block)
    if n_pad != n:
        tok_flat = jnp.pad(tok_flat, ((0, n_pad - n), (0, 0)))
    grid = (n_pad // block,)

    # --- raise the scoped VMEM limit only when the estimate needs it --------
    vmem_limit = None
    want = int(est * 1.25)
    if want > _DEFAULT_SCOPED_VMEM:
        vmem_limit = min(want, _VMEM_HARD_CAP)

    compiler_params = pltpu.CompilerParams(
        dimension_semantics=("parallel",),
        vmem_limit_bytes=vmem_limit,
    )

    tok_spec = pl.BlockSpec((block, 1), lambda i: (i, 0))
    val_spec = pl.BlockSpec((block, 1), lambda i: (i, 0))
    table_spec = pl.BlockSpec((v, d), lambda i: (0, 0))   # constant index_map: one DMA
    vw_spec = pl.BlockSpec((1, d), lambda i: (0, 0))
    out_spec = pl.BlockSpec((block, d), lambda i: (i, 0))  # true-width d: no 4x padding traffic

    if values is None:
        # Grid-invariant fused table computed once here (tiny XLA op).
        fused_table = (index_weight + token_values * value_weight_row).astype(mxu_dtype)
        out = pl.pallas_call(
            _fused_gather_kernel,
            out_shape=jax.ShapeDtypeStruct((n_pad, d), jnp.float32),
            grid_spec=pltpu.PrefetchScalarGridSpec(
                num_scalar_prefetch=0,
                grid=grid,
                in_specs=[tok_spec, table_spec],
                out_specs=out_spec,
            ),
            compiler_params=compiler_params,
        )(tok_flat, fused_table)
    else:
        val_flat = values.reshape(-1, 1).astype(jnp.float32)
        if n_pad != n:
            val_flat = jnp.pad(val_flat, ((0, n_pad - n), (0, 0)))
        out = pl.pallas_call(
            _discrete_plus_values_kernel,
            out_shape=jax.ShapeDtypeStruct((n_pad, d), jnp.float32),
            grid_spec=pltpu.PrefetchScalarGridSpec(
                num_scalar_prefetch=0,
                grid=grid,
                in_specs=[tok_spec, val_spec, table_spec, vw_spec],
                out_specs=out_spec,
            ),
            compiler_params=compiler_params,
        )(tok_flat, val_flat, index_weight.astype(mxu_dtype),
          value_weight_row.astype(jnp.float32))

    if n_pad != n:
        out = out[:n]
    return out.reshape(out_struct_shape)


# ---------------------------------------------------------------------------
# Main: deterministic params + reference check
# ---------------------------------------------------------------------------
if __name__ == "__main__":
    V = 64      # num_embeddings
    D = 32      # embedding_dim
    B, S = 2, 8
    PADDING_IDX = 0

    key = jax.random.PRNGKey(0)
    k_iw, k_vw, k_tok, k_val = jax.random.split(key, 4)

    # nn.init.normal_(..., std=0.01) analogues
    index_weight = 0.01 * jax.random.normal(k_iw, (V, D), dtype=jnp.float32)
    value_layer_w = 0.01 * jax.random.normal(k_vw, (D, 1), dtype=jnp.float32)  # nn.Linear(1, D).weight
    token_values = jnp.linspace(0.0, 1.0, V, dtype=jnp.float32).reshape(V, 1)

    # _fill_padding_idx_with_zero()
    index_weight = index_weight.at[PADDING_IDX].set(0.0)
    token_values = token_values.at[PADDING_IDX].set(0.0)

    value_weight_row = value_layer_w.T  # (1, D)

    tokens = jax.random.randint(k_tok, (B, S), 0, V, dtype=jnp.int32)
    values = jax.random.uniform(k_val, (B, S), dtype=jnp.float32)

    fwd = jax.jit(
        discrete_continuous_embedding,
        static_argnames=("block_n", "use_bf16_mxu"),
    )

    # --- path 1: forward(tokens) (values=None), exact f32 path ---
    out1 = jax.block_until_ready(fwd(tokens, index_weight, token_values, value_weight_row))
    weight_ref = index_weight + token_values @ value_weight_row       # (V, D)
    ref1 = weight_ref[tokens]                                         # (B, S, D)
    assert out1.shape == (B, S, D)
    assert jnp.allclose(out1, ref1, atol=1e-5, rtol=1e-5)

    # --- path 2: forward(tokens, values), exact f32 path ---
    out2 = jax.block_until_ready(fwd(tokens, index_weight, token_values, value_weight_row, values))
    ref2 = index_weight[tokens] + (values.reshape(-1, 1) @ value_weight_row).reshape(B, S, D)
    assert out2.shape == (B, S, D)
    assert jnp.allclose(out2, ref2, atol=1e-5, rtol=1e-5)

    # --- path 1 again with the bf16 MXU option (table bf16-rounded, selection exact) ---
    out3 = jax.block_until_ready(fwd(tokens, index_weight, token_values, value_weight_row,
                                     use_bf16_mxu=True))
    assert jnp.allclose(out3, ref1, atol=1e-3, rtol=1e-2)

    print("KERNEL_OK")
</pallas_src>

<mosaic_0001>
module attributes {stable_mosaic.version = 11 : i64} {
  func.func @_fused_gather_kernel(%arg0: i32, %arg1: memref<16x1xi32, #tpu.memory_space<vmem>>, %arg2: memref<64x32xf32, #tpu.memory_space<vmem>>, %arg3: memref<16x32xf32, #tpu.memory_space<vmem>>) attributes {dimension_semantics = [#tpu.dimension_semantics<parallel>], iteration_bounds = array<i64: 1>, scalar_prefetch = 0 : i64, scratch_operands = 0 : i64, tpu.core_type = #tpu.core_type<tc>, window_params = [{transform_indices = @transform_0, window_bounds = array<i64: 16, 1>}, {pipeline_mode = #tpu.pipeline_mode<synchronous>, transform_indices = @transform_1, window_bounds = array<i64: 64, 32>}, {transform_indices = @transform_2, window_bounds = array<i64: 16, 32>}]} {
    %0 = tpu.iota {dimensions = array<i32: 1>} : vector<16x64xi32>
    %c0 = arith.constant 0 : index
    %c0_0 = arith.constant 0 : index
    %1 = vector.load %arg1[%c0, %c0_0] : memref<16x1xi32, #tpu.memory_space<vmem>>, vector<16x1xi32>
    %2 = vector.broadcast %1 : vector<16x1xi32> to vector<16x64xi32>
    %3 = arith.cmpi eq, %2, %0 : vector<16x64xi32>
    %4 = arith.extui %3 : vector<16x64xi1> to vector<16x64xi32>
    %5 = arith.sitofp %4 : vector<16x64xi32> to vector<16x64xf32>
    %c0_1 = arith.constant 0 : index
    %c0_2 = arith.constant 0 : index
    %6 = vector.load %arg2[%c0_1, %c0_2] : memref<64x32xf32, #tpu.memory_space<vmem>>, vector<64x32xf32>
    %cst = arith.constant dense<0.000000e+00> : vector<16x32xf32>
    %7 = tpu.matmul %5, %6, %cst {dimension_numbers = #tpu.dot_dimension_numbers<[1], [0], [0], [1], [0, 0, 1, 1], [], []>} : vector<16x64xf32>, vector<64x32xf32>, vector<16x32xf32> -> vector<16x32xf32>
    %c0_3 = arith.constant 0 : index
    %c0_4 = arith.constant 0 : index
    %8 = vector.load %arg3[%c0_3, %c0_4] : memref<16x32xf32, #tpu.memory_space<vmem>>, vector<16x32xf32>
    tpu.vector_store %arg3[%c0_3, %c0_4], %7 {strides = array<i32>} : memref<16x32xf32, #tpu.memory_space<vmem>>, vector<16x32xf32>,
    return
  }
  func.func @transform_0(%arg0: i32) -> (i32, i32) {
    %c0_i32 = arith.constant 0 : i32
    %c0_i32_0 = arith.constant 0 : i32
    return %arg0, %c0_i32 : i32, i32
  }
  func.func @transform_1(%arg0: i32) -> (i32, i32) {
    %c0_i32 = arith.constant 0 : i32
    %c0_i32_0 = arith.constant 0 : i32
    %c0_i32_1 = arith.constant 0 : i32
    return %c0_i32, %c0_i32_0 : i32, i32
  }
  func.func @transform_2(%arg0: i32) -> (i32, i32) {
    %c0_i32 = arith.constant 0 : i32
    %c0_i32_0 = arith.constant 0 : i32
    return %arg0, %c0_i32 : i32, i32
  }
}

</mosaic_0001>

<bundles_post_ra>
// kernel: discrete_continuous_embedding.1
= control target key start
LH: loop header
LB: loop body
LE: loop exit
PB: predicated region body
PF: predicated region fallthrough
CT: control target
= control target key end

     0   :  { %v216_v2 = vmov 0   ;;  %s278_s0 = inlined_call_operand.vmem [shape: s32[16,1], index: 0, kind: input, shape index: {}]   ;;  %s279_s1 = inlined_call_operand.vmem [shape: f32[64,32], index: 1, kind: input, shape index: {}]   ;;  %s280_s2 = inlined_call_operand.hbm [shape: f32[16,32], index: 2, kind: output, shape index: {}]  }
   0x1   :  { %v14_v0 = vld [vmem:[%s278_s0] sm:$0xff]  ;;  %191 = vset.pattern.permute.xlu0 %v216_v2  ;;  %v29_v3 = vld [vmem:[%s279_s1 + $0x8] sm:$0xff]  ;;  %v30_v4 = vld [vmem:[%s279_s1 + $0x10] sm:$0xff] }
   0x2   :  { %v28_v1 = vld [vmem:[%s279_s1] sm:$0xff]  ;;  %v31_v5 = vld [vmem:[%s279_s1 + $0x18] sm:$0xff]  ;;  %17 = vperm.xlu0 %191, %v14_v0   ;;  %v15_v6 = vld [vmem:[%s278_s0 + $0x8] sm:$0xff] }
   0x3   :  { %v170_v7 = vpack.c.bf16 %v29_v3, %v28_v1  ;;  %v174_v8 = vpack.c.bf16 %v31_v5, %v30_v4  ;;  %v32_v9 = vld [vmem:[%s279_s1 + $0x20] sm:$0xff]  ;;  %v33_v10 = vld [vmem:[%s279_s1 + $0x28] sm:$0xff] }
   0x4   :  { %7 = vsyncpa [#allocation3], 0  ;;  %v178_v11 = vpack.c.bf16 %v33_v10, %v32_v9  ;;  %v34_v12 = vld [vmem:[%s279_s1 + $0x30] sm:$0xff]  ;;  %v35_v13 = vld [vmem:[%s279_s1 + $0x38] sm:$0xff]  ;;  %v12_v15 = vlaneseq  ;;  %vm36_vm0 = vcmask 523264   ;;  %v217_v18 = vmov 0.0  }
   0x5   :  { %171 = vmatprep.subr.bf16.mxu0 %v170_v7  ;;  %v182_v14 = vpack.c.bf16 %v35_v13, %v34_v12  ;;  %s218_s28 = smov [#allocation2]   ;;  %vm118_vm3 = vcmask 261120  }
   0x6   :  { %173 = vmatpush3.bf16.msra.mxu0 %v170_v7  ;;  %20 = vperm.xlu0 %191, %v15_v6   ;;  %v13_v16 = vand.u32 127, %v12_v15  ;;  %s126_s1 = sshll.u32 %s218_s28, 4  ;;  %s127_s1 = int_to_ptr.vmem [resolvable:$true] %s126_s1 }
   0x7   :  { %175 = vmatprep.subr.bf16.mxu0 %v174_v8  ;;  %s192_s29 = scalar_lea.vmem %s127_s1, 256  ;;  %p197_p1 = scmp.lt.s32.totalorder %s127_s1, %s127_s1 }
   0x8   :  { %p193_p0 = scmp.ne.s32.totalorder %s127_s1, %s192_s29  ;;  %p198_p2 = scmp.lt.s32.totalorder %s192_s29, %s192_s29 }
   0xa   :  { %177 = vmatpush3.bf16.msra.mxu0 %v174_v8  ;;  %p199_p3 = por %p198_p2, %p197_p1 }
   0xb   :  { %179 = vmatprep.subr.bf16.mxu0 %v178_v11 }
   0xc   :  { %p200_p4 = pnand %p199_p3, %p193_p0 }
   0xe   :  { %181 = vmatpush3.bf16.msra.mxu0 %v178_v11 }
   0xf   :  { %183 = vmatprep.subr.bf16.mxu0 %v182_v14 }
  0x12   :  { %185 = vmatpush3.bf16.msra.mxu0 %v182_v14 }
  0x81   :  { %v18_v17 = vpop.permute.xlu0 %17 }
  0x82   :  { %vm22_vm1 = vcmp.eq.s32.totalorder %v18_v17, %v13_v16 }
  0x83   :  { %v137_v19 = vsel %vm22_vm1, 1.0, %v217_v18 }
  0x84   :  { %167 = vmatprep.mubr.msk.f32.mxu0 %vm36_vm0, %v137_v19 }
  0x85   :  { %v21_v20 = vpop.permute.xlu0 %20 }
  0x86   :  { %vm23_vm2 = vcmp.eq.s32.totalorder %v21_v20, %v13_v16 }
  0x87   :  { %v138_v21 = vsel %vm23_vm2, 1.0, %v217_v18 }
  0x88   :  { %168 = vmatmul.mubr.msk.f32.vlgmr.msra.gmra.mrb[0].mxu0 %vm36_vm0, %v138_v21 }
 0x15b   :  { %v169_v22 = vpop.f32.mrb[0].mxu0 }
 0x15c   :  { %120 = vst.msk [vmem:[#allocation2 + $0x8] sm:$0xff] %vm118_vm3, %v169_v22  ;;  %v109_v23 = vpop.f32.mrb[1].mxu0 }
 0x15d   :  { %119 = vst.msk [vmem:[#allocation2] sm:$0xff] %vm118_vm3, %v109_v23 }
 0x15e   :  { %203 = shalt.err (!%p200_p4)
}
 0x15f   :  { %s204_s4 = scalar_lea.hbm %s280_s2, 256 }
 0x160   :  { %p205_p5 = scmp.ne.s32.totalorder %s280_s2, %s204_s4  ;;  %p208_p6 = scmp.lt.u32.totalorder %s204_s4, %s280_s2 }
 0x162   :  { %p210_p7 = pnand %p208_p6, %p205_p5 }
 0x164   :  { %213 = shalt.err (!%p210_p7)
}
 0x165   :  { %s219_s9 = smov 128   ;;  %s220_s10 = smov 8  }
 0x166   :  { %132 = dma.vmem_to_hbm [thread:$0]  %s127_s1, 256, %s280_s2, [#allocation3], %s219_s9, %s219_s9, %s220_s10  }
 0x167   :  { %214 = dma.done.wait [#allocation3], 256  }
 0x168   :  { %215 = vsyncadd [#allocation3], 4294967040 }
 0x169   :  { %136 = vsyncpa [#allocation3], 1 }

</bundles_post_ra>
